<compile_context>
chip_gen: v6e
topology: v6e:2x2x1
jax: 0.10.0
libtpu: 0.0.40
codegen_flags: <defaults>
</compile_context>

<pallas_src>
import jax
import jax.numpy as jnp
from jax.experimental import pallas as pl
from jax.experimental.pallas import tpu as pltpu

EPS = 1e-5
NUM_CLASSES = 365
PADDED_CLASSES = 384          # next multiple of 128 -> lane-dense output
NEG_INF = -1e30


def classification_net_kernel(
    x_ref,      # (N, 512)
    w1_ref,     # (512, 256)
    bn1_ref,    # (2, 256)  row 0 = gamma1, row 1 = beta1
    w2_ref,     # (256, 384) zero-padded columns 365..383
    bn2_ref,    # (2, 384)  row 0 = gamma2 (padded 0), row 1 = beta2 (padded 0)
    out_ref,    # (N, 384)
):
    x = x_ref[...]

    # --- fc1 (bias omitted: exactly cancelled by BN1 mean subtraction) ---
    h = jnp.dot(x, w1_ref[...], preferred_element_type=jnp.float32)

    # --- bn1 (training-mode batch stats) fused into one scale/shift ---
    mu1 = jnp.mean(h, axis=0, keepdims=True)
    var1 = jnp.mean(h * h, axis=0, keepdims=True) - mu1 * mu1
    s1 = bn1_ref[0:1, :] * jax.lax.rsqrt(var1 + EPS)
    t1 = bn1_ref[1:2, :] - mu1 * s1
    h = jnp.maximum(h * s1 + t1, 0.0)            # BN1 + ReLU

    # --- fc2 (bias omitted; classes padded to 384 lanes) ---
    z = jnp.dot(h, w2_ref[...], preferred_element_type=jnp.float32)

    # --- bn2 fused scale/shift (padded cols: gamma=beta=0 -> stay exactly 0) ---
    mu2 = jnp.mean(z, axis=0, keepdims=True)
    var2 = jnp.mean(z * z, axis=0, keepdims=True) - mu2 * mu2
    s2 = bn2_ref[0:1, :] * jax.lax.rsqrt(var2 + EPS)
    t2 = bn2_ref[1:2, :] - mu2 * s2
    z = z * s2 + t2

    # --- mask padded logits, then log_softmax over classes ---
    lane = jax.lax.broadcasted_iota(jnp.int32, (1, PADDED_CLASSES), 1)
    z = jnp.where(lane < NUM_CLASSES, z, NEG_INF)
    zmax = jnp.max(z, axis=-1, keepdims=True)
    zc = z - zmax
    lse = jnp.log(jnp.sum(jnp.exp(zc), axis=-1, keepdims=True))
    out_ref[...] = zc - lse


def pack_params(p):
    """Pack/pad torch-style params into the 4 kernel weight slabs (do once)."""
    w1 = p["w1"]                                                    # (512, 256)
    bn1 = jnp.stack([p["g1"], p["be1"]], axis=0)                    # (2, 256)
    w2p = jnp.zeros((256, PADDED_CLASSES), jnp.float32)
    w2p = w2p.at[:, :NUM_CLASSES].set(p["w2"])                      # (256, 384)
    bn2 = jnp.zeros((2, PADDED_CLASSES), jnp.float32)
    bn2 = bn2.at[0, :NUM_CLASSES].set(p["g2"])
    bn2 = bn2.at[1, :NUM_CLASSES].set(p["be2"])                     # (2, 384)
    return w1, bn1, w2p, bn2


def classification_net(x, packed):
    """x: (N, 512) f32; packed: output of pack_params. Returns (N, 365) log-probs."""
    N = x.shape[0]
    w1, bn1, w2p, bn2 = packed

    def full_spec(shape):
        # whole-array block (block dims equal full array dims -> layout-legal)
        return pl.BlockSpec(shape, lambda: tuple(0 for _ in shape))

    args = (x, w1, bn1, w2p, bn2)
    out = pl.pallas_call(
        classification_net_kernel,
        out_shape=jax.ShapeDtypeStruct((N, PADDED_CLASSES), jnp.float32),
        grid=(),
        in_specs=[full_spec(a.shape) for a in args],
        out_specs=full_spec((N, PADDED_CLASSES)),
        compiler_params=pltpu.CompilerParams(vmem_limit_bytes=32 << 20),
    )(*args)
    return out[:, :NUM_CLASSES]


def init_params(key):
    """Deterministic init mimicking PyTorch defaults (uniform +-1/sqrt(fan_in))."""
    k1, k2, k3, k4 = jax.random.split(key, 4)
    lim1 = 1.0 / jnp.sqrt(512.0)
    lim2 = 1.0 / jnp.sqrt(256.0)
    return {
        # stored as (in, out) so the kernel computes x @ W directly
        "w1": jax.random.uniform(k1, (512, 256), jnp.float32, -lim1, lim1),
        "b1": jax.random.uniform(k2, (256,), jnp.float32, -lim1, lim1),
        "g1": jnp.ones((256,), jnp.float32),      # bn1.weight
        "be1": jnp.zeros((256,), jnp.float32),    # bn1.bias
        "w2": jax.random.uniform(k3, (256, 365), jnp.float32, -lim2, lim2),
        "b2": jax.random.uniform(k4, (365,), jnp.float32, -lim2, lim2),
        "g2": jnp.ones((365,), jnp.float32),      # bn2.weight
        "be2": jnp.zeros((365,), jnp.float32),    # bn2.bias
    }


def reference_forward(x, p):
    """Plain-JAX reference replicating the PyTorch forward (training-mode BN),
    including the fc biases (which BN cancels), to validate the kernel."""
    h = x @ p["w1"] + p["b1"]
    mu = h.mean(0, keepdims=True)
    var = ((h - mu) ** 2).mean(0, keepdims=True)
    h = (h - mu) / jnp.sqrt(var + EPS) * p["g1"] + p["be1"]
    h = jnp.maximum(h, 0.0)
    z = h @ p["w2"] + p["b2"]
    mu = z.mean(0, keepdims=True)
    var = ((z - mu) ** 2).mean(0, keepdims=True)
    z = (z - mu) / jnp.sqrt(var + EPS) * p["g2"] + p["be2"]
    return jax.nn.log_softmax(z, axis=-1)


if __name__ == "__main__":
    key = jax.random.PRNGKey(0)
    kx, kp = jax.random.split(key)

    N = 8  # small batch; feature dims (512 -> 256 -> 365) fixed by the module
    x = jax.random.normal(kx, (N, 512), jnp.float32)
    params = init_params(kp)
    packed = pack_params(params)

    out = classification_net(x, packed)
    out = jax.block_until_ready(out)

    ref = reference_forward(x, params)
    assert out.shape == (N, NUM_CLASSES)
    assert jnp.allclose(out, ref, atol=1e-4, rtol=1e-4), "mismatch vs JAX reference"

    print("KERNEL_OK")
</pallas_src>

<mosaic_0001>
module attributes {stable_mosaic.version = 11 : i64} {
  func.func @classification_net_kernel(%arg0: memref<8x512xf32, #tpu.memory_space<vmem>>, %arg1: memref<512x256xf32, #tpu.memory_space<vmem>>, %arg2: memref<2x256xf32, #tpu.memory_space<vmem>>, %arg3: memref<256x384xf32, #tpu.memory_space<vmem>>, %arg4: memref<2x384xf32, #tpu.memory_space<vmem>>, %arg5: memref<8x384xf32, #tpu.memory_space<vmem>>) attributes {dimension_semantics = [], scalar_prefetch = 0 : i64, scratch_operands = 0 : i64, tpu.core_type = #tpu.core_type<tc>} {
    %c0 = arith.constant 0 : index
    %c0_0 = arith.constant 0 : index
    %0 = vector.load %arg0[%c0, %c0_0] : memref<8x512xf32, #tpu.memory_space<vmem>>, vector<8x512xf32>
    %c0_1 = arith.constant 0 : index
    %c0_2 = arith.constant 0 : index
    %1 = vector.load %arg1[%c0_1, %c0_2] : memref<512x256xf32, #tpu.memory_space<vmem>>, vector<512x256xf32>
    %cst = arith.constant dense<0.000000e+00> : vector<8x256xf32>
    %2 = tpu.matmul %0, %1, %cst {dimension_numbers = #tpu.dot_dimension_numbers<[1], [0], [0], [1], [0, 0, 1, 1], [], []>} : vector<8x512xf32>, vector<512x256xf32>, vector<8x256xf32> -> vector<8x256xf32>
    %cst_3 = arith.constant dense<0.000000e+00> : vector<256xf32>
    %3 = vector.multi_reduction <add>, %2, %cst_3 [0] : vector<8x256xf32> to vector<256xf32>
    %4 = vector.shape_cast %3 : vector<256xf32> to vector<1x256xf32>
    %cst_4 = arith.constant 8.000000e+00 : f32
    %5 = vector.broadcast %cst_4 : f32 to vector<1x256xf32>
    %6 = arith.divf %4, %5 : vector<1x256xf32>
    %7 = arith.mulf %2, %2 : vector<8x256xf32>
    %cst_5 = arith.constant dense<0.000000e+00> : vector<256xf32>
    %8 = vector.multi_reduction <add>, %7, %cst_5 [0] : vector<8x256xf32> to vector<256xf32>
    %9 = vector.shape_cast %8 : vector<256xf32> to vector<1x256xf32>
    %cst_6 = arith.constant 8.000000e+00 : f32
    %10 = vector.broadcast %cst_6 : f32 to vector<1x256xf32>
    %11 = arith.divf %9, %10 : vector<1x256xf32>
    %12 = arith.mulf %6, %6 : vector<1x256xf32>
    %13 = arith.subf %11, %12 : vector<1x256xf32>
    %c0_7 = arith.constant 0 : index
    %c0_8 = arith.constant 0 : index
    %14 = vector.load %arg2[%c0_7, %c0_8] : memref<2x256xf32, #tpu.memory_space<vmem>>, vector<1x256xf32>
    %cst_9 = arith.constant 9.99999974E-6 : f32
    %15 = vector.broadcast %cst_9 : f32 to vector<1x256xf32>
    %16 = arith.addf %13, %15 : vector<1x256xf32>
    %17 = math.rsqrt %16 : vector<1x256xf32>
    %18 = arith.mulf %14, %17 : vector<1x256xf32>
    %c1 = arith.constant 1 : index
    %c0_10 = arith.constant 0 : index
    %19 = vector.load %arg2[%c1, %c0_10] : memref<2x256xf32, #tpu.memory_space<vmem>>, vector<1x256xf32>
    %20 = arith.mulf %6, %18 : vector<1x256xf32>
    %21 = arith.subf %19, %20 : vector<1x256xf32>
    %22 = vector.broadcast %18 : vector<1x256xf32> to vector<8x256xf32>
    %23 = arith.mulf %2, %22 : vector<8x256xf32>
    %24 = vector.broadcast %21 : vector<1x256xf32> to vector<8x256xf32>
    %25 = arith.addf %23, %24 : vector<8x256xf32>
    %cst_11 = arith.constant 0.000000e+00 : f32
    %26 = vector.broadcast %cst_11 : f32 to vector<8x256xf32>
    %27 = arith.maximumf %25, %26 : vector<8x256xf32>
    %c0_12 = arith.constant 0 : index
    %c0_13 = arith.constant 0 : index
    %28 = vector.load %arg3[%c0_12, %c0_13] : memref<256x384xf32, #tpu.memory_space<vmem>>, vector<256x384xf32>
    %cst_14 = arith.constant dense<0.000000e+00> : vector<8x384xf32>
    %29 = tpu.matmul %27, %28, %cst_14 {dimension_numbers = #tpu.dot_dimension_numbers<[1], [0], [0], [1], [0, 0, 1, 1], [], []>} : vector<8x256xf32>, vector<256x384xf32>, vector<8x384xf32> -> vector<8x384xf32>
    %cst_15 = arith.constant dense<0.000000e+00> : vector<384xf32>
    %30 = vector.multi_reduction <add>, %29, %cst_15 [0] : vector<8x384xf32> to vector<384xf32>
    %31 = vector.shape_cast %30 : vector<384xf32> to vector<1x384xf32>
    %cst_16 = arith.constant 8.000000e+00 : f32
    %32 = vector.broadcast %cst_16 : f32 to vector<1x384xf32>
    %33 = arith.divf %31, %32 : vector<1x384xf32>
    %34 = arith.mulf %29, %29 : vector<8x384xf32>
    %cst_17 = arith.constant dense<0.000000e+00> : vector<384xf32>
    %35 = vector.multi_reduction <add>, %34, %cst_17 [0] : vector<8x384xf32> to vector<384xf32>
    %36 = vector.shape_cast %35 : vector<384xf32> to vector<1x384xf32>
    %cst_18 = arith.constant 8.000000e+00 : f32
    %37 = vector.broadcast %cst_18 : f32 to vector<1x384xf32>
    %38 = arith.divf %36, %37 : vector<1x384xf32>
    %39 = arith.mulf %33, %33 : vector<1x384xf32>
    %40 = arith.subf %38, %39 : vector<1x384xf32>
    %c0_19 = arith.constant 0 : index
    %c0_20 = arith.constant 0 : index
    %41 = vector.load %arg4[%c0_19, %c0_20] : memref<2x384xf32, #tpu.memory_space<vmem>>, vector<1x384xf32>
    %cst_21 = arith.constant 9.99999974E-6 : f32
    %42 = vector.broadcast %cst_21 : f32 to vector<1x384xf32>
    %43 = arith.addf %40, %42 : vector<1x384xf32>
    %44 = math.rsqrt %43 : vector<1x384xf32>
    %45 = arith.mulf %41, %44 : vector<1x384xf32>
    %c1_22 = arith.constant 1 : index
    %c0_23 = arith.constant 0 : index
    %46 = vector.load %arg4[%c1_22, %c0_23] : memref<2x384xf32, #tpu.memory_space<vmem>>, vector<1x384xf32>
    %47 = arith.mulf %33, %45 : vector<1x384xf32>
    %48 = arith.subf %46, %47 : vector<1x384xf32>
    %49 = vector.broadcast %45 : vector<1x384xf32> to vector<8x384xf32>
    %50 = arith.mulf %29, %49 : vector<8x384xf32>
    %51 = vector.broadcast %48 : vector<1x384xf32> to vector<8x384xf32>
    %52 = arith.addf %50, %51 : vector<8x384xf32>
    %53 = tpu.iota {dimensions = array<i32: 1>} : vector<1x384xi32>
    %c365_i32 = arith.constant 365 : i32
    %54 = vector.broadcast %c365_i32 : i32 to vector<1x384xi32>
    %55 = arith.cmpi slt, %53, %54 : vector<1x384xi32>
    %cst_24 = arith.constant -1.000000e+30 : f32
    %56 = vector.shape_cast %55 : vector<1x384xi1> to vector<1x384xi1>
    %57 = vector.broadcast %56 : vector<1x384xi1> to vector<8x384xi1>
    %58 = vector.broadcast %cst_24 : f32 to vector<8x384xf32>
    %59 = arith.select %57, %52, %58 : vector<8x384xi1>, vector<8x384xf32>
    %cst_25 = arith.constant dense<0xFF800000> : vector<8xf32>
    %60 = vector.multi_reduction <maximumf>, %59, %cst_25 [1] : vector<8x384xf32> to vector<8xf32>
    %61 = vector.shape_cast %60 : vector<8xf32> to vector<8x1xf32>
    %62 = vector.broadcast %61 : vector<8x1xf32> to vector<8x384xf32>
    %63 = arith.subf %59, %62 : vector<8x384xf32>
    %64 = math.exp %63 : vector<8x384xf32>
    %cst_26 = arith.constant dense<0.000000e+00> : vector<8xf32>
    %65 = vector.multi_reduction <add>, %64, %cst_26 [1] : vector<8x384xf32> to vector<8xf32>
    %66 = vector.shape_cast %65 : vector<8xf32> to vector<8x1xf32>
    %67 = math.log %66 : vector<8x1xf32>
    %68 = vector.broadcast %67 : vector<8x1xf32> to vector<8x384xf32>
    %69 = arith.subf %63, %68 : vector<8x384xf32>
    %c0_27 = arith.constant 0 : index
    %c0_28 = arith.constant 0 : index
    %70 = vector.load %arg5[%c0_27, %c0_28] : memref<8x384xf32, #tpu.memory_space<vmem>>, vector<8x384xf32>
    tpu.vector_store %arg5[%c0_27, %c0_28], %69 {strides = array<i32>} : memref<8x384xf32, #tpu.memory_space<vmem>>, vector<8x384xf32>,
    return
  }
}

</mosaic_0001>

<bundles_post_ra>
// kernel: tpu_custom_call.1
= control target key start
LH: loop header
LB: loop body
LE: loop exit
PB: predicated region body
PF: predicated region fallthrough
CT: control target
= control target key end

     0   :  { %10 = vsyncpa [#allocation3], 0  ;;  %s1201_s0 = inlined_call_operand.hbm [shape: f32[8,512], index: 0, kind: input, shape index: {}]   ;;  %s1202_s1 = inlined_call_operand.hbm [shape: f32[512,256], index: 1, kind: input, shape index: {}]   ;;  %s1203_s2 = inlined_call_operand.hbm [shape: f32[2,256], index: 2, kind: input, shape index: {}]   ;;  %s1204_s3 = inlined_call_operand.hbm [shape: f32[256,384], index: 3, kind: input, shape index: {}]   ;;  %s1205_s4 = inlined_call_operand.vmem [shape: f32[2,384], index: 4, kind: input, shape index: {}]   ;;  %s1206_s5 = inlined_call_operand.hbm [shape: f32[8,384], index: 5, kind: output, shape index: {}]  }
   0x1   :  { %11 = vsyncpa [#allocation6], 0 }
   0x2   :  { %12 = vsyncpa [#allocation9], 0 }
   0x3   :  { %13 = vsyncpa [#allocation4], 0  ;;  %s1080_s18 = smov [#allocation5]  }
   0x4   :  { %s29_s19 = sshll.u32 %s1080_s18, 4  ;;  %s30_s19 = int_to_ptr.vmem [resolvable:$true] %s29_s19 }
   0x5   :  { %s980_s20 = scalar_lea.vmem %s30_s19, 16384  ;;  %p985_p1 = scmp.lt.s32.totalorder %s30_s19, %s30_s19 }
   0x6   :  { %p981_p0 = scmp.ne.s32.totalorder %s30_s19, %s980_s20  ;;  %p986_p2 = scmp.lt.s32.totalorder %s980_s20, %s980_s20 }
   0x8   :  { %p987_p3 = por %p986_p2, %p985_p1 }
   0xa   :  { %p988_p4 = pnand %p987_p3, %p981_p0 }
   0xc   :  { %991 = shalt.err (!%p988_p4)
}
   0xd   :  { %s1081_s21 = smov 256   ;;  %s1082_s22 = smov 16  }
   0xe   :  { %35 = dma.hbm_to_vmem [thread:$0]  %s1202_s1, 16384, %s30_s19, [#allocation6], %s1081_s21, %s1081_s21, %s1082_s22  }
   0xf   :  { %s1083_s25 = smov [#allocation2]   ;;  %s1084_s27 = smov [#allocation7]  }
  0x10   :  { %s20_s26 = sshll.u32 %s1083_s25, 4  ;;  %s42_s28 = sshll.u32 %s1084_s27, 4  ;;  %s21_s26 = int_to_ptr.vmem [resolvable:$true] %s20_s26  ;;  %s43_s28 = int_to_ptr.vmem [resolvable:$true] %s42_s28 }
  0x11   :  { %s1000_s29 = scalar_lea.vmem %s21_s26, 512  ;;  %p1005_p6 = scmp.lt.s32.totalorder %s21_s26, %s21_s26 }
  0x12   :  { %p1001_p5 = scmp.ne.s32.totalorder %s21_s26, %s1000_s29  ;;  %p1006_p7 = scmp.lt.s32.totalorder %s1000_s29, %s1000_s29 }
  0x14   :  { %p1007_p8 = por %p1006_p7, %p1005_p6 }
  0x16   :  { %p1008_p9 = pnand %p1007_p8, %p1001_p5 }
  0x18   :  { %1011 = shalt.err (!%p1008_p9)
}
  0x19   :  { %23 = dma.hbm_to_vmem [thread:$0]  %s1201_s0, 512, %s21_s26, [#allocation3]  }
  0x1a   :  { %s1020_s7 = scalar_lea.vmem %s43_s28, 64  ;;  %p1025_p11 = scmp.lt.s32.totalorder %s43_s28, %s43_s28 }
  0x1b   :  { %p1021_p10 = scmp.ne.s32.totalorder %s43_s28, %s1020_s7  ;;  %p1026_p12 = scmp.lt.s32.totalorder %s1020_s7, %s1020_s7 }
  0x1d   :  { %p1027_p13 = por %p1026_p12, %p1025_p11 }
  0x1f   :  { %p1028_p0 = pnand %p1027_p13, %p1021_p10 }
  0x21   :  { %1031 = shalt.err (!%p1028_p0)
}
  0x22   :  { %45 = dma.hbm_to_vmem [thread:$0]  %s1203_s2, 64, %s43_s28, [#allocation6]  }
  0x23   :  { %s1085_s9 = smov [#allocation8]  }
  0x24   :  { %s51_s10 = sshll.u32 %s1085_s9, 4  ;;  %s52_s10 = int_to_ptr.vmem [resolvable:$true] %s51_s10 }
  0x25   :  { %s1040_s11 = scalar_lea.vmem %s52_s10, 12288  ;;  %p1045_p2 = scmp.lt.s32.totalorder %s52_s10, %s52_s10 }
  0x26   :  { %p1041_p1 = scmp.ne.s32.totalorder %s52_s10, %s1040_s11  ;;  %p1046_p3 = scmp.lt.s32.totalorder %s1040_s11, %s1040_s11 }
  0x28   :  { %p1047_p4 = por %p1046_p3, %p1045_p2 }
  0x2a   :  { %p1048_p5 = pnand %p1047_p4, %p1041_p1 }
  0x2c   :  { %1051 = shalt.err (!%p1048_p5)
}
  0x2d   :  { %s1086_s0 = smov 384   ;;  %s1087_s12 = smov 24  }
  0x2e   :  { %57 = dma.hbm_to_vmem [thread:$0]  %s1204_s3, 12288, %s52_s10, [#allocation9], %s1086_s0, %s1086_s0, %s1087_s12  }
  0x2f   :  { %1072 = dma.done.wait [#allocation3], 512  }
  0x30   :  { %1073 = vsyncadd [#allocation3], 4294966784 }
  0x31   :  { %1074 = dma.done.wait [#allocation6], 16448  }
  0x32   :  { %1075 = vsyncadd [#allocation6], 4294950848 }
  0x33   :  { %1076 = dma.done.wait [#allocation9], 12288  }
  0x34   :  { %1077 = vsyncadd [#allocation9], 4294955008  ;;  %v107_v0 = vld [vmem:[#allocation5 + $0xf8] sm:$0xff]  ;;  %v106_v2 = vld [vmem:[#allocation5 + $0xf0] sm:$0xff] }
  0x35   :  { %v171_v1 = vld [vmem:[#allocation5 + $0x2f8] sm:$0xff]  ;;  %204 = vmatprep.subr.mxu0 %v107_v0  ;;  %v170_v3 = vld [vmem:[#allocation5 + $0x2f0] sm:$0xff]  ;;  %v105_v4 = vld [vmem:[#allocation5 + $0xe8] sm:$0xff] }
  0x36   :  { %275 = vmatprep.subr.mxu1 %v171_v1  ;;  %v169_v5 = vld [vmem:[#allocation5 + $0x2e8] sm:$0xff]  ;;  %205 = vmatpush1.msra.mxu0 %v106_v2  ;;  %v104_v6 = vld [vmem:[#allocation5 + $0xe0] sm:$0xff]  ;;  %v103_v8 = vld [vmem:[#allocation5 + $0xd8] sm:$0xff] }
  0x37   :  { %276 = vmatpush1.msra.mxu1 %v170_v3  ;;  %v168_v7 = vld [vmem:[#allocation5 + $0x2e0] sm:$0xff]  ;;  %206 = vmatprep.subr.mxu0 %v105_v4  ;;  %v167_v9 = vld [vmem:[#allocation5 + $0x2d8] sm:$0xff]  ;;  %v102_v10 = vld [vmem:[#allocation5 + $0xd0] sm:$0xff] }
  0x38   :  { %277 = vmatprep.subr.mxu1 %v169_v5  ;;  %v166_v11 = vld [vmem:[#allocation5 + $0x2d0] sm:$0xff]  ;;  %207 = vmatpush1.msra.mxu0 %v104_v6  ;;  %v101_v12 = vld [vmem:[#allocation5 + $0xc8] sm:$0xff]  ;;  %v100_v14 = vld [vmem:[#allocation5 + $0xc0] sm:$0xff] }
  0x39   :  { %278 = vmatpush1.msra.mxu1 %v168_v7  ;;  %v165_v13 = vld [vmem:[#allocation5 + $0x2c8] sm:$0xff]  ;;  %208 = vmatprep.subr.mxu0 %v103_v8  ;;  %v164_v15 = vld [vmem:[#allocation5 + $0x2c0] sm:$0xff]  ;;  %v99_v16 = vld [vmem:[#allocation5 + $0xb8] sm:$0xff] }
  0x3a   :  { %279 = vmatprep.subr.mxu1 %v167_v9  ;;  %209 = vmatpush1.msra.mxu0 %v102_v10  ;;  %v163_v17 = vld [vmem:[#allocation5 + $0x2b8] sm:$0xff]  ;;  %v98_v18 = vld [vmem:[#allocation5 + $0xb0] sm:$0xff]  ;;  %v97_v20 = vld [vmem:[#allocation5 + $0xa8] sm:$0xff] }
  0x3b   :  { %280 = vmatpush1.msra.mxu1 %v166_v11  ;;  %210 = vmatprep.subr.mxu0 %v101_v12  ;;  %v162_v19 = vld [vmem:[#allocation5 + $0x2b0] sm:$0xff]  ;;  %v161_v21 = vld [vmem:[#allocation5 + $0x2a8] sm:$0xff]  ;;  %v96_v22 = vld [vmem:[#allocation5 + $0xa0] sm:$0xff] }
  0x3c   :  { %281 = vmatprep.subr.mxu1 %v165_v13  ;;  %211 = vmatpush1.msra.mxu0 %v100_v14  ;;  %v160_v23 = vld [vmem:[#allocation5 + $0x2a0] sm:$0xff]  ;;  %v95_v24 = vld [vmem:[#allocation5 + $0x98] sm:$0xff]  ;;  %v94_v26 = vld [vmem:[#allocation5 + $0x90] sm:$0xff] }
  0x3d   :  { %282 = vmatpush1.msra.mxu1 %v164_v15  ;;  %212 = vmatprep.subr.mxu0 %v99_v16  ;;  %v159_v25 = vld [vmem:[#allocation5 + $0x298] sm:$0xff]  ;;  %v158_v27 = vld [vmem:[#allocation5 + $0x290] sm:$0xff]  ;;  %v93_v28 = vld [vmem:[#allocation5 + $0x88] sm:$0xff] }
  0x3e   :  { %283 = vmatprep.subr.mxu1 %v163_v17  ;;  %213 = vmatpush1.msra.mxu0 %v98_v18  ;;  %v157_v29 = vld [vmem:[#allocation5 + $0x288] sm:$0xff]  ;;  %v92_v30 = vld [vmem:[#allocation5 + $0x80] sm:$0xff]  ;;  %v91_v32 = vld [vmem:[#allocation5 + $0x78] sm:$0xff] }
  0x3f   :  { %284 = vmatpush1.msra.mxu1 %v162_v19  ;;  %214 = vmatprep.subr.mxu0 %v97_v20  ;;  %v156_v31 = vld [vmem:[#allocation5 + $0x280] sm:$0xff]  ;;  %v155_v33 = vld [vmem:[#allocation5 + $0x278] sm:$0xff]  ;;  %v90_v34 = vld [vmem:[#allocation5 + $0x70] sm:$0xff] }
  0x40   :  { %285 = vmatprep.subr.mxu1 %v161_v21  ;;  %215 = vmatpush1.msra.mxu0 %v96_v22  ;;  %v154_v35 = vld [vmem:[#allocation5 + $0x270] sm:$0xff]  ;;  %v89_v36 = vld [vmem:[#allocation5 + $0x68] sm:$0xff]  ;;  %v88_v38 = vld [vmem:[#allocation5 + $0x60] sm:$0xff] }
  0x41   :  { %286 = vmatpush1.msra.mxu1 %v160_v23  ;;  %216 = vmatprep.subr.mxu0 %v95_v24  ;;  %v153_v37 = vld [vmem:[#allocation5 + $0x268] sm:$0xff]  ;;  %v152_v39 = vld [vmem:[#allocation5 + $0x260] sm:$0xff]  ;;  %v87_v40 = vld [vmem:[#allocation5 + $0x58] sm:$0xff] }
  0x42   :  { %287 = vmatprep.subr.mxu1 %v159_v25  ;;  %217 = vmatpush1.msra.mxu0 %v94_v26  ;;  %v151_v41 = vld [vmem:[#allocation5 + $0x258] sm:$0xff]  ;;  %v86_v42 = vld [vmem:[#allocation5 + $0x50] sm:$0xff]  ;;  %v85_v44 = vld [vmem:[#allocation5 + $0x48] sm:$0xff] }
  0x43   :  { %288 = vmatpush1.msra.mxu1 %v158_v27  ;;  %218 = vmatprep.subr.mxu0 %v93_v28  ;;  %v150_v43 = vld [vmem:[#allocation5 + $0x250] sm:$0xff]  ;;  %v149_v45 = vld [vmem:[#allocation5 + $0x248] sm:$0xff]  ;;  %v84_v46 = vld [vmem:[#allocation5 + $0x40] sm:$0xff] }
  0x44   :  { %289 = vmatprep.subr.mxu1 %v157_v29  ;;  %219 = vmatpush1.msra.mxu0 %v92_v30  ;;  %v148_v47 = vld [vmem:[#allocation5 + $0x240] sm:$0xff]  ;;  %v83_v48 = vld [vmem:[#allocation5 + $0x38] sm:$0xff]  ;;  %v82_v50 = vld [vmem:[#allocation5 + $0x30] sm:$0xff] }
  0x45   :  { %290 = vmatpush1.msra.mxu1 %v156_v31  ;;  %220 = vmatprep.subr.mxu0 %v91_v32  ;;  %v147_v49 = vld [vmem:[#allocation5 + $0x238] sm:$0xff]  ;;  %v146_v51 = vld [vmem:[#allocation5 + $0x230] sm:$0xff]  ;;  %v81_v52 = vld [vmem:[#allocation5 + $0x28] sm:$0xff] }
  0x46   :  { %291 = vmatprep.subr.mxu1 %v155_v33  ;;  %221 = vmatpush1.msra.mxu0 %v90_v34  ;;  %v145_v53 = vld [vmem:[#allocation5 + $0x228] sm:$0xff]  ;;  %v80_v54 = vld [vmem:[#allocation5 + $0x20] sm:$0xff]  ;;  %v79_v56 = vld [vmem:[#allocation5 + $0x18] sm:$0xff] }
  0x47   :  { %292 = vmatpush1.msra.mxu1 %v154_v35  ;;  %222 = vmatprep.subr.mxu0 %v89_v36  ;;  %v144_v55 = vld [vmem:[#allocation5 + $0x220] sm:$0xff]  ;;  %v143_v57 = vld [vmem:[#allocation5 + $0x218] sm:$0xff]  ;;  %v78_v58 = vld [vmem:[#allocation5 + $0x10] sm:$0xff] }
  0x48   :  { %293 = vmatprep.subr.mxu1 %v153_v37  ;;  %223 = vmatpush1.msra.mxu0 %v88_v38  ;;  %v142_v59 = vld [vmem:[#allocation5 + $0x210] sm:$0xff]  ;;  %v77_v60 = vld [vmem:[#allocation5 + $0x8] sm:$0xff]  ;;  %v76_v62 = vld [vmem:[#allocation5] sm:$0xff] }
  0x49   :  { %294 = vmatpush1.msra.mxu1 %v152_v39  ;;  %224 = vmatprep.subr.mxu0 %v87_v40  ;;  %v141_v61 = vld [vmem:[#allocation5 + $0x208] sm:$0xff]  ;;  %v140_v63 = vld [vmem:[#allocation5 + $0x200] sm:$0xff]  ;;  %v139_v0 = vld [vmem:[#allocation5 + $0x1f8] sm:$0xff] }
  0x4a   :  { %295 = vmatprep.subr.mxu1 %v151_v41  ;;  %225 = vmatpush1.msra.mxu0 %v86_v42  ;;  %v203_v1 = vld [vmem:[#allocation5 + $0x3f8] sm:$0xff]  ;;  %v138_v2 = vld [vmem:[#allocation5 + $0x1f0] sm:$0xff]  ;;  %v137_v4 = vld [vmem:[#allocation5 + $0x1e8] sm:$0xff] }
  0x4b   :  { %296 = vmatpush1.msra.mxu1 %v150_v43  ;;  %226 = vmatprep.subr.mxu0 %v85_v44  ;;  %v202_v3 = vld [vmem:[#allocation5 + $0x3f0] sm:$0xff]  ;;  %v201_v5 = vld [vmem:[#allocation5 + $0x3e8] sm:$0xff]  ;;  %v136_v6 = vld [vmem:[#allocation5 + $0x1e0] sm:$0xff] }
  0x4c   :  { %297 = vmatprep.subr.mxu1 %v149_v45  ;;  %227 = vmatpush1.msra.mxu0 %v84_v46  ;;  %v200_v7 = vld [vmem:[#allocation5 + $0x3e0] sm:$0xff]  ;;  %v135_v8 = vld [vmem:[#allocation5 + $0x1d8] sm:$0xff]  ;;  %v134_v10 = vld [vmem:[#allocation5 + $0x1d0] sm:$0xff] }
  0x4d   :  { %298 = vmatpush1.msra.mxu1 %v148_v47  ;;  %228 = vmatprep.subr.mxu0 %v83_v48  ;;  %v199_v9 = vld [vmem:[#allocation5 + $0x3d8] sm:$0xff]  ;;  %v198_v11 = vld [vmem:[#allocation5 + $0x3d0] sm:$0xff]  ;;  %v133_v12 = vld [vmem:[#allocation5 + $0x1c8] sm:$0xff] }
  0x4e   :  { %299 = vmatprep.subr.mxu1 %v147_v49  ;;  %229 = vmatpush1.msra.mxu0 %v82_v50  ;;  %v197_v13 = vld [vmem:[#allocation5 + $0x3c8] sm:$0xff]  ;;  %v132_v14 = vld [vmem:[#allocation5 + $0x1c0] sm:$0xff]  ;;  %v131_v16 = vld [vmem:[#allocation5 + $0x1b8] sm:$0xff] }
  0x4f   :  { %300 = vmatpush1.msra.mxu1 %v146_v51  ;;  %230 = vmatprep.subr.mxu0 %v81_v52  ;;  %v196_v15 = vld [vmem:[#allocation5 + $0x3c0] sm:$0xff]  ;;  %v195_v17 = vld [vmem:[#allocation5 + $0x3b8] sm:$0xff]  ;;  %v130_v18 = vld [vmem:[#allocation5 + $0x1b0] sm:$0xff] }
  0x50   :  { %301 = vmatprep.subr.mxu1 %v145_v53  ;;  %231 = vmatpush1.msra.mxu0 %v80_v54  ;;  %v194_v19 = vld [vmem:[#allocation5 + $0x3b0] sm:$0xff]  ;;  %v129_v20 = vld [vmem:[#allocation5 + $0x1a8] sm:$0xff]  ;;  %v128_v22 = vld [vmem:[#allocation5 + $0x1a0] sm:$0xff] }
  0x51   :  { %302 = vmatpush1.msra.mxu1 %v144_v55  ;;  %232 = vmatprep.subr.mxu0 %v79_v56  ;;  %v193_v21 = vld [vmem:[#allocation5 + $0x3a8] sm:$0xff]  ;;  %v192_v23 = vld [vmem:[#allocation5 + $0x3a0] sm:$0xff]  ;;  %v127_v24 = vld [vmem:[#allocation5 + $0x198] sm:$0xff] }
  0x52   :  { %303 = vmatprep.subr.mxu1 %v143_v57  ;;  %233 = vmatpush1.msra.mxu0 %v78_v58  ;;  %v191_v25 = vld [vmem:[#allocation5 + $0x398] sm:$0xff]  ;;  %v126_v26 = vld [vmem:[#allocation5 + $0x190] sm:$0xff]  ;;  %v125_v28 = vld [vmem:[#allocation5 + $0x188] sm:$0xff] }
  0x53   :  { %304 = vmatpush1.msra.mxu1 %v142_v59  ;;  %234 = vmatprep.subr.mxu0 %v77_v60  ;;  %v190_v27 = vld [vmem:[#allocation5 + $0x390] sm:$0xff]  ;;  %v189_v29 = vld [vmem:[#allocation5 + $0x388] sm:$0xff]  ;;  %v124_v30 = vld [vmem:[#allocation5 + $0x180] sm:$0xff] }
  0x54   :  { %305 = vmatprep.subr.mxu1 %v141_v61  ;;  %235 = vmatpush1.msra.mxu0 %v76_v62  ;;  %v188_v31 = vld [vmem:[#allocation5 + $0x380] sm:$0xff]  ;;  %v123_v32 = vld [vmem:[#allocation5 + $0x178] sm:$0xff]  ;;  %v122_v34 = vld [vmem:[#allocation5 + $0x170] sm:$0xff] }
  0x55   :  { %306 = vmatpush1.msra.mxu1 %v140_v63  ;;  %236 = vmatprep.subr.mxu0 %v139_v0  ;;  %v187_v33 = vld [vmem:[#allocation5 + $0x378] sm:$0xff]  ;;  %v186_v35 = vld [vmem:[#allocation5 + $0x370] sm:$0xff]  ;;  %v121_v36 = vld [vmem:[#allocation5 + $0x168] sm:$0xff] }
  0x56   :  { %307 = vmatprep.subr.mxu1 %v203_v1  ;;  %237 = vmatpush2.msra.mxu0 %v138_v2  ;;  %v185_v37 = vld [vmem:[#allocation5 + $0x368] sm:$0xff]  ;;  %v120_v38 = vld [vmem:[#allocation5 + $0x160] sm:$0xff]  ;;  %v119_v40 = vld [vmem:[#allocation5 + $0x158] sm:$0xff] }
  0x57   :  { %308 = vmatpush2.msra.mxu1 %v202_v3  ;;  %238 = vmatprep.subr.mxu0 %v137_v4  ;;  %v184_v39 = vld [vmem:[#allocation5 + $0x360] sm:$0xff]  ;;  %v183_v41 = vld [vmem:[#allocation5 + $0x358] sm:$0xff]  ;;  %v118_v42 = vld [vmem:[#allocation5 + $0x150] sm:$0xff] }
  0x58   :  { %309 = vmatprep.subr.mxu1 %v201_v5  ;;  %239 = vmatpush2.msra.mxu0 %v136_v6  ;;  %v182_v43 = vld [vmem:[#allocation5 + $0x350] sm:$0xff]  ;;  %v117_v44 = vld [vmem:[#allocation5 + $0x148] sm:$0xff]  ;;  %v116_v46 = vld [vmem:[#allocation5 + $0x140] sm:$0xff] }
  0x59   :  { %310 = vmatpush2.msra.mxu1 %v200_v7  ;;  %240 = vmatprep.subr.mxu0 %v135_v8  ;;  %v181_v45 = vld [vmem:[#allocation5 + $0x348] sm:$0xff]  ;;  %v180_v47 = vld [vmem:[#allocation5 + $0x340] sm:$0xff]  ;;  %v115_v48 = vld [vmem:[#allocation5 + $0x138] sm:$0xff] }
  0x5a   :  { %311 = vmatprep.subr.mxu1 %v199_v9  ;;  %241 = vmatpush2.msra.mxu0 %v134_v10  ;;  %v179_v49 = vld [vmem:[#allocation5 + $0x338] sm:$0xff]  ;;  %v114_v50 = vld [vmem:[#allocation5 + $0x130] sm:$0xff]  ;;  %v113_v52 = vld [vmem:[#allocation5 + $0x128] sm:$0xff] }
  0x5b   :  { %312 = vmatpush2.msra.mxu1 %v198_v11  ;;  %242 = vmatprep.subr.mxu0 %v133_v12  ;;  %v178_v51 = vld [vmem:[#allocation5 + $0x330] sm:$0xff]  ;;  %v177_v53 = vld [vmem:[#allocation5 + $0x328] sm:$0xff]  ;;  %v112_v54 = vld [vmem:[#allocation5 + $0x120] sm:$0xff] }
  0x5c   :  { %313 = vmatprep.subr.mxu1 %v197_v13  ;;  %243 = vmatpush2.msra.mxu0 %v132_v14  ;;  %v176_v55 = vld [vmem:[#allocation5 + $0x320] sm:$0xff]  ;;  %v111_v56 = vld [vmem:[#allocation5 + $0x118] sm:$0xff]  ;;  %v110_v58 = vld [vmem:[#allocation5 + $0x110] sm:$0xff] }
  0x5d   :  { %314 = vmatpush2.msra.mxu1 %v196_v15  ;;  %244 = vmatprep.subr.mxu0 %v131_v16  ;;  %v175_v57 = vld [vmem:[#allocation5 + $0x318] sm:$0xff]  ;;  %v174_v59 = vld [vmem:[#allocation5 + $0x310] sm:$0xff]  ;;  %v109_v60 = vld [vmem:[#allocation5 + $0x108] sm:$0xff] }
  0x5e   :  { %315 = vmatprep.subr.mxu1 %v195_v17  ;;  %245 = vmatpush2.msra.mxu0 %v130_v18  ;;  %v173_v61 = vld [vmem:[#allocation5 + $0x308] sm:$0xff]  ;;  %v108_v62 = vld [vmem:[#allocation5 + $0x100] sm:$0xff]  ;;  %v75_v1 = vld [vmem:[#allocation2 + $0x18] sm:$0xff] }
  0x5f   :  { %316 = vmatpush2.msra.mxu1 %v194_v19  ;;  %246 = vmatprep.subr.mxu0 %v129_v20  ;;  %v73_v63 = vld [vmem:[#allocation2 + $0x8] sm:$0xff]  ;;  %v172_v0 = vld [vmem:[#allocation5 + $0x300] sm:$0xff]  ;;  %v74_v3 = vld [vmem:[#allocation2 + $0x10] sm:$0xff] }
  0x60   :  { %317 = vmatprep.subr.mxu1 %v193_v21  ;;  %247 = vmatpush2.msra.mxu0 %v128_v22  ;;  %v72_v2 = vld [vmem:[#allocation2] sm:$0xff]  ;;  %v502_v4 = vld [vmem:[#allocation8 + $0x170] sm:$0xff]  ;;  %v501_v5 = vld [vmem:[#allocation8 + $0x168] sm:$0xff] }
  0x61   :  { %318 = vmatpush2.msra.mxu1 %v192_v23  ;;  %248 = vmatprep.subr.mxu0 %v127_v24  ;;  %v499_v6 = vld [vmem:[#allocation8 + $0x158] sm:$0xff]  ;;  %v498_v7 = vld [vmem:[#allocation8 + $0x150] sm:$0xff]  ;;  %v496_v8 = vld [vmem:[#allocation8 + $0x140] sm:$0xff] }
  0x62   :  { %319 = vmatprep.subr.mxu1 %v191_v25  ;;  %249 = vmatpush2.msra.mxu0 %v126_v26  ;;  %v495_v9 = vld [vmem:[#allocation8 + $0x138] sm:$0xff]  ;;  %v493_v10 = vld [vmem:[#allocation8 + $0x128] sm:$0xff]  ;;  %v492_v11 = vld [vmem:[#allocation8 + $0x120] sm:$0xff] }
  0x63   :  { %320 = vmatpush2.msra.mxu1 %v190_v27  ;;  %250 = vmatprep.subr.mxu0 %v125_v28  ;;  %v490_v12 = vld [vmem:[#allocation8 + $0x110] sm:$0xff]  ;;  %v489_v13 = vld [vmem:[#allocation8 + $0x108] sm:$0xff]  ;;  %v487_v14 = vld [vmem:[#allocation8 + $0xf8] sm:$0xff] }
  0x64   :  { %321 = vmatprep.subr.mxu1 %v189_v29  ;;  %251 = vmatpush2.msra.mxu0 %v124_v30  ;;  %v486_v15 = vld [vmem:[#allocation8 + $0xf0] sm:$0xff]  ;;  %v484_v16 = vld [vmem:[#allocation8 + $0xe0] sm:$0xff]  ;;  %v483_v17 = vld [vmem:[#allocation8 + $0xd8] sm:$0xff] }
  0x65   :  { %322 = vmatpush2.msra.mxu1 %v188_v31  ;;  %252 = vmatprep.subr.mxu0 %v123_v32  ;;  %v481_v18 = vld [vmem:[#allocation8 + $0xc8] sm:$0xff]  ;;  %v480_v19 = vld [vmem:[#allocation8 + $0xc0] sm:$0xff]  ;;  %v478_v20 = vld [vmem:[#allocation8 + $0xb0] sm:$0xff] }
  0x66   :  { %323 = vmatprep.subr.mxu1 %v187_v33  ;;  %253 = vmatpush2.msra.mxu0 %v122_v34  ;;  %v477_v21 = vld [vmem:[#allocation8 + $0xa8] sm:$0xff]  ;;  %v475_v22 = vld [vmem:[#allocation8 + $0x98] sm:$0xff]  ;;  %v474_v23 = vld [vmem:[#allocation8 + $0x90] sm:$0xff] }
  0x67   :  { %324 = vmatpush2.msra.mxu1 %v186_v35  ;;  %254 = vmatprep.subr.mxu0 %v121_v36  ;;  %v472_v24 = vld [vmem:[#allocation8 + $0x80] sm:$0xff]  ;;  %v471_v25 = vld [vmem:[#allocation8 + $0x78] sm:$0xff]  ;;  %v469_v26 = vld [vmem:[#allocation8 + $0x68] sm:$0xff] }
  0x68   :  { %325 = vmatprep.subr.mxu1 %v185_v37  ;;  %255 = vmatpush2.msra.mxu0 %v120_v38  ;;  %v468_v27 = vld [vmem:[#allocation8 + $0x60] sm:$0xff]  ;;  %v466_v28 = vld [vmem:[#allocation8 + $0x50] sm:$0xff]  ;;  %v465_v29 = vld [vmem:[#allocation8 + $0x48] sm:$0xff] }
  0x69   :  { %326 = vmatpush2.msra.mxu1 %v184_v39  ;;  %256 = vmatprep.subr.mxu0 %v119_v40  ;;  %v463_v30 = vld [vmem:[#allocation8 + $0x38] sm:$0xff]  ;;  %v462_v31 = vld [vmem:[#allocation8 + $0x30] sm:$0xff]  ;;  %v460_v33 = vld [vmem:[#allocation8 + $0x20] sm:$0xff] }
  0x6a   :  { %327 = vmatprep.subr.mxu1 %v183_v41  ;;  %257 = vmatpush2.msra.mxu0 %v118_v42  ;;  %v551_v32 = vld [vmem:[#allocation8 + $0x2f8] sm:$0xff]  ;;  %v548_v36 = vld [vmem:[#allocation8 + $0x2e0] sm:$0xff]  ;;  %v457_v38 = vld [vmem:[#allocation8 + $0x8] sm:$0xff] }
  0x6b   :  { %328 = vmatpush2.msra.mxu1 %v182_v43  ;;  %258 = vmatprep.subr.mxu0 %v117_v44  ;;  %v503_v34 = vld [vmem:[#allocation8 + $0x178] sm:$0xff]  ;;  %v500_v37 = vld [vmem:[#allocation8 + $0x160] sm:$0xff]  ;;  %v545_v39 = vld [vmem:[#allocation8 + $0x2c8] sm:$0xff] }
  0x6c   :  { %329 = vmatprep.subr.mxu1 %v181_v45  ;;  %259 = vmatpush2.msra.mxu0 %v116_v46  ;;  %v459_v35 = vld [vmem:[#allocation8 + $0x18] sm:$0xff]  ;;  %v456_v40 = vld [vmem:[#allocation8] sm:$0xff]  ;;  %v497_v41 = vld [vmem:[#allocation8 + $0x148] sm:$0xff] }
  0x6d   :  { %330 = vmatpush2.msra.mxu1 %v180_v47  ;;  %260 = vmatprep.subr.mxu0 %v115_v48  ;;  %v542_v42 = vld [vmem:[#allocation8 + $0x2b0] sm:$0xff]  ;;  %v549_v45 = vld [vmem:[#allocation8 + $0x2e8] sm:$0xff]  ;;  %v539_v46 = vld [vmem:[#allocation8 + $0x298] sm:$0xff] }
  0x6e   :  { %331 = vmatprep.subr.mxu1 %v179_v49  ;;  %261 = vmatpush2.msra.mxu0 %v114_v50  ;;  %v550_v43 = vld [vmem:[#allocation8 + $0x2f0] sm:$0xff]  ;;  %v547_v47 = vld [vmem:[#allocation8 + $0x2d8] sm:$0xff]  ;;  %v536_v50 = vld [vmem:[#allocation8 + $0x280] sm:$0xff] }
  0x6f   :  { %332 = vmatpush2.msra.mxu1 %v178_v51  ;;  %262 = vmatprep.subr.mxu0 %v113_v52  ;;  %v494_v44 = vld [vmem:[#allocation8 + $0x130] sm:$0xff]  ;;  %v491_v48 = vld [vmem:[#allocation8 + $0x118] sm:$0xff]  ;;  %v544_v51 = vld [vmem:[#allocation8 + $0x2c0] sm:$0xff] }
  0x70   :  { %333 = vmatprep.subr.mxu1 %v177_v53  ;;  %263 = vmatpush2.msra.mxu0 %v112_v54  ;;  %v546_v49 = vld [vmem:[#allocation8 + $0x2d0] sm:$0xff]  ;;  %v488_v52 = vld [vmem:[#allocation8 + $0x100] sm:$0xff]  ;;  %v543_v53 = vld [vmem:[#allocation8 + $0x2b8] sm:$0xff] }
  0x71   :  { %334 = vmatpush2.msra.mxu1 %v176_v55  ;;  %264 = vmatprep.subr.mxu0 %v111_v56  ;;  %v533_v54 = vld [vmem:[#allocation8 + $0x268] sm:$0xff] }
  0x72   :  { %335 = vmatprep.subr.mxu1 %v175_v57  ;;  %265 = vmatpush2.msra.mxu0 %v110_v58  ;;  %v541_v55 = vld [vmem:[#allocation8 + $0x2a8] sm:$0xff]  ;;  %v540_v57 = vld [vmem:[#allocation8 + $0x2a0] sm:$0xff]  ;;  %v530_v58 = vld [vmem:[#allocation8 + $0x250] sm:$0xff] }
  0x73   :  { %336 = vmatpush2.msra.mxu1 %v174_v59  ;;  %266 = vmatprep.subr.mxu0 %v109_v60  ;;  %v485_v56 = vld [vmem:[#allocation8 + $0xe8] sm:$0xff]  ;;  %v538_v59 = vld [vmem:[#allocation8 + $0x290] sm:$0xff] }
  0x74   :  { %337 = vmatprep.subr.mxu1 %v173_v61  ;;  %267 = vmatpush2.msra.mxu0 %v108_v62  ;;  %v482_v60 = vld [vmem:[#allocation8 + $0xd0] sm:$0xff]  ;;  %v537_v61 = vld [vmem:[#allocation8 + $0x288] sm:$0xff]  ;;  %v527_v62 = vld [vmem:[#allocation8 + $0x238] sm:$0xff] }
  0x75   :  { %268 = vmatprep.mubr.f32.mxu0 %v73_v63  ;;  %338 = vmatpush2.msra.mxu1 %v172_v0  ;;  %v535_v63 = vld [vmem:[#allocation8 + $0x278] sm:$0xff] }
  0x76   :  { %339 = vmatprep.mubr.f32.mxu1 %v75_v1  ;;  %269 = vmatmul.mubr.f32.vlgmr.msra.gmra.mxu0 %v72_v2  ;;  %v479_v0 = vld [vmem:[#allocation8 + $0xb8] sm:$0xff]  ;;  %v534_v1 = vld [vmem:[#allocation8 + $0x270] sm:$0xff]  ;;  %v524_v2 = vld [vmem:[#allocation8 + $0x220] sm:$0xff] }
  0x77   :  { %340 = vmatmul.mubr.f32.vlgmr.msra.gmra.mxu1 %v74_v3  ;;  %552 = vmatprep.subr.mxu0 %v502_v4  ;;  %v532_v3 = vld [vmem:[#allocation8 + $0x260] sm:$0xff] }
  0x78   :  { %553 = vmatpush1.msra.mxu0 %v501_v5  ;;  %909 = vmatprep.subr.mxu1 %v551_v32  ;;  %v476_v4 = vld [vmem:[#allocation8 + $0xa0] sm:$0xff]  ;;  %v531_v5 = vld [vmem:[#allocation8 + $0x258] sm:$0xff] }
  0x79   :  { %554 = vmatprep.subr.mxu0 %v499_v6  ;;  %910 = vmatpush3.msra.mxu1 %v503_v34  ;;  %v521_v6 = vld [vmem:[#allocation8 + $0x208] sm:$0xff]  ;;  %v507_v32 = vld [vmem:[#allocation8 + $0x198] sm:$0xff]  ;;  %v504_v34 = vld [vmem:[#allocation8 + $0x180] sm:$0xff] }
  0x7a   :  { %555 = vmatpush1.msra.mxu0 %v498_v7  ;;  %911 = vmatprep.subr.mxu1 %v548_v36  ;;  %v529_v7 = vld [vmem:[#allocation8 + $0x248] sm:$0xff] }
  0x7b   :  { %556 = vmatprep.subr.mxu0 %v496_v8  ;;  %912 = vmatpush3.msra.mxu1 %v500_v37  ;;  %v473_v8 = vld [vmem:[#allocation8 + $0x88] sm:$0xff] }
  0x7c   :  { %557 = vmatpush1.msra.mxu0 %v495_v9  ;;  %913 = vmatprep.subr.mxu1 %v545_v39  ;;  %v528_v9 = vld [vmem:[#allocation8 + $0x240] sm:$0xff] }
  0x7d   :  { %558 = vmatprep.subr.mxu0 %v493_v10  ;;  %914 = vmatpush3.msra.mxu1 %v497_v41  ;;  %v518_v10 = vld [vmem:[#allocation8 + $0x1f0] sm:$0xff] }
  0x7e   :  { %559 = vmatpush1.msra.mxu0 %v492_v11  ;;  %915 = vmatprep.subr.mxu1 %v542_v42  ;;  %v526_v11 = vld [vmem:[#allocation8 + $0x230] sm:$0xff] }
  0x7f   :  { %560 = vmatprep.subr.mxu0 %v490_v12  ;;  %916 = vmatpush3.msra.mxu1 %v494_v44  ;;  %v470_v12 = vld [vmem:[#allocation8 + $0x70] sm:$0xff] }
  0x80   :  { %561 = vmatpush1.msra.mxu0 %v489_v13  ;;  %917 = vmatprep.subr.mxu1 %v539_v46  ;;  %v525_v13 = vld [vmem:[#allocation8 + $0x228] sm:$0xff] }
  0x81   :  { %562 = vmatprep.subr.mxu0 %v487_v14  ;;  %918 = vmatpush3.msra.mxu1 %v491_v48  ;;  %v515_v14 = vld [vmem:[#allocation8 + $0x1d8] sm:$0xff] }
  0x82   :  { %563 = vmatpush1.msra.mxu0 %v486_v15  ;;  %919 = vmatprep.subr.mxu1 %v536_v50  ;;  %v523_v15 = vld [vmem:[#allocation8 + $0x218] sm:$0xff] }
  0x83   :  { %564 = vmatprep.subr.mxu0 %v484_v16  ;;  %920 = vmatpush3.msra.mxu1 %v488_v52  ;;  %v467_v16 = vld [vmem:[#allocation8 + $0x58] sm:$0xff] }
  0x84   :  { %565 = vmatpush1.msra.mxu0 %v483_v17  ;;  %921 = vmatprep.subr.mxu1 %v533_v54  ;;  %v522_v17 = vld [vmem:[#allocation8 + $0x210] sm:$0xff] }
  0x85   :  { %566 = vmatprep.subr.mxu0 %v481_v18  ;;  %922 = vmatpush3.msra.mxu1 %v485_v56  ;;  %v512_v18 = vld [vmem:[#allocation8 + $0x1c0] sm:$0xff] }
  0x86   :  { %567 = vmatpush1.msra.mxu0 %v480_v19  ;;  %923 = vmatprep.subr.mxu1 %v530_v58  ;;  %v520_v19 = vld [vmem:[#allocation8 + $0x200] sm:$0xff] }
  0x87   :  { %568 = vmatprep.subr.mxu0 %v478_v20  ;;  %924 = vmatpush3.msra.mxu1 %v482_v60  ;;  %v464_v20 = vld [vmem:[#allocation8 + $0x40] sm:$0xff] }
  0x88   :  { %569 = vmatpush1.msra.mxu0 %v477_v21  ;;  %925 = vmatprep.subr.mxu1 %v527_v62  ;;  %v519_v21 = vld [vmem:[#allocation8 + $0x1f8] sm:$0xff] }
  0x89   :  { %570 = vmatprep.subr.mxu0 %v475_v22  ;;  %926 = vmatpush3.msra.mxu1 %v479_v0  ;;  %v509_v22 = vld [vmem:[#allocation8 + $0x1a8] sm:$0xff] }
  0x8a   :  { %571 = vmatpush1.msra.mxu0 %v474_v23  ;;  %927 = vmatprep.subr.mxu1 %v524_v2  ;;  %v517_v23 = vld [vmem:[#allocation8 + $0x1e8] sm:$0xff] }
  0x8b   :  { %572 = vmatprep.subr.mxu0 %v472_v24  ;;  %928 = vmatpush3.msra.mxu1 %v476_v4  ;;  %v461_v24 = vld [vmem:[#allocation8 + $0x28] sm:$0xff] }
  0x8c   :  { %573 = vmatpush1.msra.mxu0 %v471_v25  ;;  %929 = vmatprep.subr.mxu1 %v521_v6  ;;  %v516_v25 = vld [vmem:[#allocation8 + $0x1e0] sm:$0xff] }
  0x8d   :  { %574 = vmatprep.subr.mxu0 %v469_v26  ;;  %930 = vmatpush3.msra.mxu1 %v473_v8  ;;  %v506_v26 = vld [vmem:[#allocation8 + $0x190] sm:$0xff] }
  0x8e   :  { %575 = vmatpush1.msra.mxu0 %v468_v27  ;;  %931 = vmatprep.subr.mxu1 %v518_v10  ;;  %v514_v27 = vld [vmem:[#allocation8 + $0x1d0] sm:$0xff] }
  0x8f   :  { %576 = vmatprep.subr.mxu0 %v466_v28  ;;  %932 = vmatpush3.msra.mxu1 %v470_v12  ;;  %v513_v28 = vld [vmem:[#allocation8 + $0x1c8] sm:$0xff] }
  0x90   :  { %577 = vmatpush1.msra.mxu0 %v465_v29  ;;  %933 = vmatprep.subr.mxu1 %v515_v14  ;;  %v511_v29 = vld [vmem:[#allocation8 + $0x1b8] sm:$0xff]  ;;  %v1088_v14 = vmov 1966171168  }
  0x91   :  { %578 = vmatprep.subr.mxu0 %v463_v30  ;;  %934 = vmatpush3.msra.mxu1 %v467_v16  ;;  %v510_v30 = vld [vmem:[#allocation8 + $0x1b0] sm:$0xff]  ;;  %v392_v16 = vlaneseq }
  0x92   :  { %579 = vmatpush1.msra.mxu0 %v462_v31  ;;  %935 = vmatprep.subr.mxu1 %v512_v18  ;;  %v508_v31 = vld [vmem:[#allocation8 + $0x1a0] sm:$0xff] }
  0x93   :  { %580 = vmatprep.subr.mxu0 %v460_v33  ;;  %936 = vmatpush3.msra.mxu1 %v464_v20  ;;  %v505_v33 = vld [vmem:[#allocation8 + $0x188] sm:$0xff]  ;;  %v1139_v18 = vshrl.u32 %v392_v16, 7 }
  0x94   :  { %581 = vmatpush1.msra.mxu0 %v459_v35  ;;  %937 = vmatprep.subr.mxu1 %v509_v22  ;;  %v458_v35 = vld [vmem:[#allocation8 + $0x10] sm:$0xff] }
  0x95   :  { %582 = vmatprep.subr.mxu0 %v457_v38  ;;  %938 = vmatpush3.msra.mxu1 %v461_v24  ;;  %v381_v24 = vld [vmem:[#allocation7] ss:$2 sm:$0x3] }
  0x96   :  { %583 = vmatpush1.msra.mxu0 %v456_v40  ;;  %939 = vmatprep.subr.mxu1 %v506_v26  ;;  %v1147_v26 = vsub.s32 0, %v1139_v18 }
  0x97   :  { %584 = vmatprep.subr.mxu0 %v550_v43  ;;  %940 = vmatpush3.msra.mxu1 %v458_v35  ;;  %v406_v35 = vld [vmem:[#allocation7 + $0x1] ss:$2 sm:$0x3] }
  0x98   :  { %585 = vmatpush2.msra.mxu0 %v549_v45 }
  0x99   :  { %586 = vmatprep.subr.mxu0 %v547_v47 }
  0x9a   :  { %587 = vmatpush2.msra.mxu0 %v546_v49 }
  0x9b   :  { %588 = vmatprep.subr.mxu0 %v544_v51 }
  0x9c   :  { %589 = vmatpush2.msra.mxu0 %v543_v53 }
  0x9d   :  { %590 = vmatprep.subr.mxu0 %v541_v55 }
  0x9e   :  { %591 = vmatpush2.msra.mxu0 %v540_v57 }
  0x9f   :  { %592 = vmatprep.subr.mxu0 %v538_v59 }
  0xa0   :  { %593 = vmatpush2.msra.mxu0 %v537_v61 }
  0xa1   :  { %594 = vmatprep.subr.mxu0 %v535_v63 }
  0xa2   :  { %595 = vmatpush2.msra.mxu0 %v534_v1 }
  0xa3   :  { %596 = vmatprep.subr.mxu0 %v532_v3 }
  0xa4   :  { %597 = vmatpush2.msra.mxu0 %v531_v5 }
  0xa5   :  { %598 = vmatprep.subr.mxu0 %v529_v7 }
  0xa6   :  { %599 = vmatpush2.msra.mxu0 %v528_v9 }
  0xa7   :  { %600 = vmatprep.subr.mxu0 %v526_v11 }
  0xa8   :  { %601 = vmatpush2.msra.mxu0 %v525_v13 }
  0xa9   :  { %602 = vmatprep.subr.mxu0 %v523_v15  ;;  %v390_v15 = vunpack.c.l.s4 %v1088_v14 }
  0xaa   :  { %603 = vmatpush2.msra.mxu0 %v522_v17 }
  0xab   :  { %604 = vmatprep.subr.mxu0 %v520_v19  ;;  %v391_v17 = vunpack.c.0.s8 %v390_v15 }
  0xac   :  { %605 = vmatpush2.msra.mxu0 %v519_v21 }
  0xad   :  { %606 = vmatprep.subr.mxu0 %v517_v23  ;;  %v1142_v20 = vsub.s32 %v391_v17, %v1139_v18 }
  0xae   :  { %607 = vmatpush2.msra.mxu0 %v516_v25 }
  0xaf   :  { %608 = vmatprep.subr.mxu0 %v514_v27  ;;  %v1150_v27 = vsub.s32 1, %v1139_v18 }
  0xb0   :  { %609 = vmatpush2.msra.mxu0 %v513_v28 }
  0xb1   :  { %610 = vmatprep.subr.mxu0 %v511_v29 }
  0xb2   :  { %611 = vmatpush2.msra.mxu0 %v510_v30 }
  0xb3   :  { %612 = vmatprep.subr.mxu0 %v508_v31 }
  0xb4   :  { %613 = vmatpush2.msra.mxu0 %v507_v32 }
  0xb5   :  { %614 = vmatprep.subr.mxu0 %v505_v33 }
  0xb6   :  { %615 = vmatpush2.msra.mxu0 %v504_v34 }
 0x136   :  { %v270_v36 = vpop.f32.mrf.mxu0 }
 0x137   :  { %v341_v37 = vpop.f32.mrf.mxu1 }
 0x138   :  { %v1132_v38 = vadd.f32 %v341_v37, %v270_v36  ;;  %v272_v39 = vpop.f32.mrf.mxu0 }
 0x139   :  { %v343_v40 = vpop.f32.mrf.mxu1 }
 0x13a   :  { %v346_v41 = vrot.slane %v1132_v38, 4  ;;  %v361_v42 = vmul.f32 %v1132_v38, %v1132_v38  ;;  %v344_v43 = vadd.f32 %v343_v40, %v272_v39 }
 0x13c   :  { %v347_v44 = vadd.f32 %v346_v41, %v1132_v38  ;;  %v363_v45 = vrot.slane %v361_v42, 4  ;;  %v352_v46 = vrot.slane %v344_v43, 4  ;;  %v362_v47 = vmul.f32 %v344_v43, %v344_v43 }
 0x13e   :  { %v348_v48 = vrot.slane %v347_v44, 2  ;;  %v364_v49 = vadd.f32 %v363_v45, %v361_v42  ;;  %v353_v50 = vadd.f32 %v352_v46, %v344_v43  ;;  %v369_v51 = vrot.slane %v362_v47, 4 }
 0x140   :  { %v349_v52 = vadd.f32 %v348_v48, %v347_v44  ;;  %v365_v53 = vrot.slane %v364_v49, 2  ;;  %v354_v54 = vrot.slane %v353_v50, 2  ;;  %v370_v55 = vadd.f32 %v369_v51, %v362_v47 }
 0x142   :  { %v350_v56 = vrot.slane %v349_v52, 1  ;;  %v366_v57 = vadd.f32 %v365_v53, %v364_v49  ;;  %v355_v58 = vadd.f32 %v354_v54, %v353_v50  ;;  %v371_v59 = vrot.slane %v370_v55, 2 }
 0x144   :  { %v351_v60 = vadd.f32 %v350_v56, %v349_v52  ;;  %v367_v61 = vrot.slane %v366_v57, 1  ;;  %v356_v62 = vrot.slane %v355_v58, 1  ;;  %v372_v63 = vadd.f32 %v371_v59, %v370_v55 }
 0x146   :  { %v359_v0 = vmul.f32 0.125, %v351_v60  ;;  %v368_v1 = vadd.f32 %v367_v61, %v366_v57  ;;  %v357_v2 = vadd.f32 %v356_v62, %v355_v58  ;;  %v373_v3 = vrot.slane %v372_v63, 1 }
 0x148   :  { %v375_v4 = vmul.f32 0.125, %v368_v1  ;;  %v377_v5 = vmul.f32 %v359_v0, %v359_v0  ;;  %v374_v6 = vadd.f32 %v373_v3, %v372_v63  ;;  %v360_v7 = vmul.f32 0.125, %v357_v2 }
 0x14a   :  { %v379_v8 = vsub.f32 %v375_v4, %v377_v5  ;;  %v376_v9 = vmul.f32 0.125, %v374_v6  ;;  %v378_v10 = vmul.f32 %v360_v7, %v360_v7 }
 0x14c   :  { %v382_v11 = vadd.f32 1e-05, %v379_v8  ;;  %v380_v12 = vsub.f32 %v376_v9, %v378_v10 }
 0x14e   :  { %v383_v13 = vadd.f32 1e-05, %v380_v12  ;;  %954 = vrsqrt.f32 %v382_v11 }
 0x150   :  { %956 = vrsqrt.f32 %v383_v13 }
 0x15b   :  { %v955_v19 = vpop.eup %954 }
 0x15d   :  { %v957_v21 = vpop.eup %956 }
 0x15e   :  { %v388_v22 = vcombine.low %v955_v19, %v957_v21 }
 0x160   :  { %v395_v23 = vrot.slane %v388_v22, %v1142_v20 }
 0x162   :  { %v402_v25 = vrot.slane %v395_v23, %v1142_v20 }
 0x164   :  { %v404_v28 = vmul.f32 %v402_v25, %v381_v24 }
 0x166   :  { %v411_v29 = vrot.slane %v404_v28, %v1147_v26  ;;  %v415_v30 = vrot.slane %v404_v28, %v1150_v27 }
 0x168   :  { %v418_v31 = vmul.f32 %v411_v29, %v359_v0  ;;  %v419_v32 = vmul.f32 %v415_v30, %v360_v7  ;;  %v440_v39 = vmul.f32 %v415_v30, %v344_v43  ;;  %v439_v41 = vmul.f32 %v411_v29, %v1132_v38 }
 0x16a   :  { %v422_v33 = vcombine.low %v418_v31, %v419_v32 }
 0x16c   :  { %v429_v34 = vrot.slane %v422_v33, %v1142_v20 }
 0x16e   :  { %v436_v36 = vrot.slane %v429_v34, %v1142_v20 }
 0x170   :  { %v438_v37 = vsub.f32 %v406_v35, %v436_v36 }
 0x172   :  { %v449_v40 = vrot.slane %v438_v37, %v1150_v27  ;;  %v445_v42 = vrot.slane %v438_v37, %v1147_v26 }
 0x174   :  { %v453_v44 = vadd.f32 %v449_v40, %v440_v39  ;;  %v452_v45 = vadd.f32 %v445_v42, %v439_v41 }
 0x176   :  { %v455_v46 = vmax.f32 %v453_v44, 0.0  ;;  %v454_v47 = vmax.f32 %v452_v45, 0.0 }
 0x178   :  { %616 = vmatprep.mubr.f32.mxu0 %v455_v46  ;;  %687 = vmatprep.mubr.f32.mxu1 %v455_v46 }
 0x179   :  { %617 = vmatmul.mubr.f32.vlgmr.msra.gmra.mxu0 %v454_v47  ;;  %688 = vmatmul.mubr.f32.vlgmr.msra.gmra.mxu1 %v454_v47 }
 0x239   :  { %v1159_v48 = vpop.f32.mrf.mxu0  ;;  %v941_v49 = vpop.f32.mrf.mxu1 }
 0x23a   :  { %v693_v50 = vrot.slane %v1159_v48, 4  ;;  %v714_v43 = vmul.f32 %v1159_v48, %v1159_v48 }
 0x23b   :  { %v1164_v51 = vpop.f32.mrf.mxu0  ;;  %v942_v38 = vpop.f32.mrf.mxu1 }
 0x23c   :  { %v694_v52 = vadd.f32 %v693_v50, %v1159_v48  ;;  %v717_v53 = vrot.slane %v714_v43, 4  ;;  %v699_v54 = vrot.slane %v1164_v51, 4  ;;  %v715_v55 = vmul.f32 %v1164_v51, %v1164_v51 }
 0x23d   :  { %v1170_v56 = vadd.f32 %v942_v38, %v941_v49 }
 0x23e   :  { %v695_v57 = vrot.slane %v694_v52, 2  ;;  %v718_v58 = vadd.f32 %v717_v53, %v714_v43  ;;  %v700_v59 = vadd.f32 %v699_v54, %v1164_v51  ;;  %v723_v60 = vrot.slane %v715_v55, 4 }
 0x23f   :  { %v705_v61 = vrot.slane %v1170_v56, 4  ;;  %v716_v62 = vmul.f32 %v1170_v56, %v1170_v56 }
 0x240   :  { %v696_v63 = vadd.f32 %v695_v57, %v694_v52  ;;  %v719_v0 = vrot.slane %v718_v58, 2  ;;  %v701_v1 = vrot.slane %v700_v59, 2  ;;  %v724_v2 = vadd.f32 %v723_v60, %v715_v55  ;;  %v744_v55 = vld [vmem:[%s1205_s4] ss:$2 sm:$0x7] }
 0x241   :  { %v706_v3 = vadd.f32 %v1170_v56, %v705_v61  ;;  %v729_v4 = vrot.slane %v716_v62, 4 }
 0x242   :  { %v697_v5 = vrot.slane %v696_v63, 1  ;;  %v720_v6 = vadd.f32 %v719_v0, %v718_v58  ;;  %v702_v7 = vadd.f32 %v701_v1, %v700_v59  ;;  %v725_v8 = vrot.slane %v724_v2, 2 }
 0x243   :  { %v707_v9 = vrot.slane %v706_v3, 2  ;;  %v730_v10 = vadd.f32 %v729_v4, %v716_v62  ;;  %v792_v58 = vsub.s32 2, %v1139_v18  ;;  %v908_v18 = vld [vmem:[%s1205_s4 + $0x1] ss:$2 sm:$0x7]  ;;  %s1089_s4 = smov [#allocation10]  }
 0x244   :  { %v698_v11 = vadd.f32 %v697_v5, %v696_v63  ;;  %v721_v12 = vrot.slane %v720_v6, 1  ;;  %v703_v13 = vrot.slane %v702_v7, 1  ;;  %v726_v14 = vadd.f32 %v725_v8, %v724_v2  ;;  %s897_s17 = sshll.u32 %s1089_s4, 4  ;;  %s898_s17 = int_to_ptr.vmem [resolvable:$true] %s897_s17 }
 0x245   :  { %v708_v15 = vadd.f32 %v707_v9, %v706_v3  ;;  %v731_v17 = vrot.slane %v730_v10, 2  ;;  %v851_v5 = vand.u32 127, %v392_v16  ;;  %s1052_s18 = scalar_lea.vmem %s898_s17, 384  ;;  %p1057_p7 = scmp.lt.s32.totalorder %s898_s17, %s898_s17 }
 0x246   :  { %v711_v19 = vmul.f32 0.125, %v698_v11  ;;  %v722_v21 = vadd.f32 %v721_v12, %v720_v6  ;;  %v704_v22 = vadd.f32 %v703_v13, %v702_v7  ;;  %v727_v23 = vrot.slane %v726_v14, 1  ;;  %p1053_p6 = scmp.ne.s32.totalorder %s898_s17, %s1052_s18  ;;  %p1058_p8 = scmp.lt.s32.totalorder %s1052_s18, %s1052_s18 }
 0x247   :  { %v709_v24 = vrot.slane %v708_v15, 1  ;;  %v732_v25 = vadd.f32 %v731_v17, %v730_v10  ;;  %v853_v8 = vadd.s32 256, %v851_v5 }
 0x248   :  { %v735_v28 = vmul.f32 0.125, %v722_v21  ;;  %v738_v29 = vmul.f32 %v711_v19, %v711_v19  ;;  %v712_v30 = vmul.f32 0.125, %v704_v22  ;;  %v728_v31 = vadd.f32 %v727_v23, %v726_v14  ;;  %p1059_p9 = por %p1058_p8, %p1057_p7 }
 0x249   :  { %v733_v32 = vrot.slane %v732_v25, 1  ;;  %v710_v33 = vadd.f32 %v709_v24, %v708_v15  ;;  %vm856_vm0 = vcmp.lt.s32.totalorder %v853_v8, 365 }
 0x24a   :  { %v741_v34 = vsub.f32 %v735_v28, %v738_v29  ;;  %v736_v35 = vmul.f32 0.125, %v728_v31  ;;  %v739_v36 = vmul.f32 %v712_v30, %v712_v30  ;;  %p1060_p10 = pnand %p1059_p9, %p1053_p6 }
 0x24b   :  { %v734_v37 = vadd.f32 %v733_v32, %v732_v25  ;;  %v713_v39 = vmul.f32 0.125, %v710_v33 }
 0x24c   :  { %v745_v40 = vadd.f32 1e-05, %v741_v34  ;;  %v742_v41 = vsub.f32 %v736_v35, %v739_v36 }
 0x24d   :  { %v737_v42 = vmul.f32 0.125, %v734_v37  ;;  %v740_v44 = vmul.f32 %v713_v39, %v713_v39 }
 0x24e   :  { %v746_v45 = vadd.f32 1e-05, %v742_v41  ;;  %958 = vrsqrt.f32 %v745_v40 }
 0x24f   :  { %v743_v46 = vsub.f32 %v737_v42, %v740_v44 }
 0x250   :  { %960 = vrsqrt.f32 %v746_v45 }
 0x251   :  { %v747_v47 = vadd.f32 1e-05, %v743_v46 }
 0x253   :  { %962 = vrsqrt.f32 %v747_v47 }
 0x25b   :  { %v959_v49 = vpop.eup %958 }
 0x25d   :  { %v961_v50 = vpop.eup %960 }
 0x25e   :  { %v754_v43 = vcombine.low %v959_v49, %v961_v50 }
 0x260   :  { %v963_v38 = vpop.eup %962  ;;  %v761_v52 = vrot.slane %v754_v43, %v1142_v20 }
 0x261   :  { %v768_v53 = vrot.slane %v963_v38, %v1142_v20 }
 0x263   :  { %v769_v54 = vcombine.low %v761_v52, %v768_v53 }
 0x265   :  { %v776_v57 = vrot.slane %v769_v54, %v1142_v20 }
 0x267   :  { %v778_v59 = vmul.f32 %v776_v57, %v744_v55 }
 0x269   :  { %v785_v60 = vrot.slane %v778_v59, %v1147_v26  ;;  %v789_v61 = vrot.slane %v778_v59, %v1150_v27  ;;  %v793_v62 = vrot.slane %v778_v59, %v792_v58 }
 0x26b   :  { %v797_v63 = vmul.f32 %v785_v60, %v711_v19  ;;  %v798_v0 = vmul.f32 %v789_v61, %v712_v30  ;;  %v799_v1 = vmul.f32 %v793_v62, %v713_v39  ;;  %v828_v10 = vmul.f32 %v785_v60, %v1159_v48 }
 0x26c   :  { %v829_v11 = vmul.f32 %v789_v61, %v1164_v51  ;;  %v830_v12 = vmul.f32 %v1170_v56, %v793_v62 }
 0x26d   :  { %v803_v2 = vcombine.low %v797_v63, %v798_v0  ;;  %v817_v4 = vrot.slane %v799_v1, %v1142_v20 }
 0x26f   :  { %v810_v3 = vrot.slane %v803_v2, %v1142_v20 }
 0x271   :  { %v818_v6 = vcombine.low %v810_v3, %v817_v4 }
 0x273   :  { %v825_v7 = vrot.slane %v818_v6, %v1142_v20 }
 0x275   :  { %v827_v9 = vsub.f32 %v908_v18, %v825_v7 }
 0x277   :  { %v835_v13 = vrot.slane %v827_v9, %v1147_v26  ;;  %v839_v14 = vrot.slane %v827_v9, %v1150_v27  ;;  %v843_v16 = vrot.slane %v827_v9, %v792_v58 }
 0x279   :  { %v847_v15 = vadd.f32 %v835_v13, %v828_v10  ;;  %v848_v17 = vadd.f32 %v839_v14, %v829_v11  ;;  %v849_v19 = vadd.f32 %v843_v16, %v830_v12 }
 0x27b   :  { %v865_v21 = vsel %vm856_vm0, %v849_v19, -1e+30  ;;  %v866_v22 = vmax.f32 %v847_v15, %v848_v17 }
 0x27d   :  { %v867_v20 = vmax.f32 %v866_v22, %v865_v21 }
 0x27f   :  { %868 = vmax.xlane.f32.xlu0 %v867_v20 }
 0x308   :  { %v869_v23 = vpop.xlane.xlu0 %868 }
 0x309   :  { %v870_v24 = vsub.f32 %v847_v15, %v869_v23  ;;  %v871_v48 = vsub.f32 %v848_v17, %v869_v23  ;;  %v872_v25 = vsub.f32 %v865_v21, %v869_v23 }
 0x30b   :  { %v873_v51 = vmul.f32 1.442695, %v870_v24  ;;  %v875_v28 = vmul.f32 1.442695, %v871_v48  ;;  %v877_v56 = vmul.f32 1.442695, %v872_v25 }
 0x30d   :  { %964 = vpow2.f32 %v873_v51 }
 0x30e   :  { %966 = vpow2.f32 %v875_v28 }
 0x30f   :  { %968 = vpow2.f32 %v877_v56 }
 0x31a   :  { %v965_v26 = vpop.eup %964 }
 0x31b   :  { %v967_v27 = vpop.eup %966 }
 0x31c   :  { %v879_v29 = vadd.f32 %v967_v27, %v965_v26  ;;  %v969_v30 = vpop.eup %968 }
 0x31e   :  { %v880_v31 = vadd.f32 %v969_v30, %v879_v29 }
 0x320   :  { %881 = vadd.xlane.f32.xlu0 %v880_v31 }
 0x3a9   :  { %v882_v32 = vpop.xlane.xlu0 %881 }
 0x3aa   :  { %970 = vlog2.f32 %v882_v32 }
 0x3b7   :  { %v971_v33 = vpop.eup %970 }
 0x3b8   :  { %v884_v34 = vmul.f32 0.6931472, %v971_v33 }
 0x3ba   :  { %v885_v35 = vsub.f32 %v870_v24, %v884_v34  ;;  %v886_v36 = vsub.f32 %v871_v48, %v884_v34  ;;  %v887_v37 = vsub.f32 %v872_v25, %v884_v34 }
 0x3bc   :  { %888 = vst [vmem:[#allocation10] sm:$0xff] %v885_v35  ;;  %889 = vst [vmem:[#allocation10 + $0x8] sm:$0xff] %v886_v36 }
 0x3bd   :  { %890 = vst [vmem:[#allocation10 + $0x10] sm:$0xff] %v887_v37 }
 0x3be   :  { %1063 = shalt.err (!%p1060_p10)
}
 0x3bf   :  { %900 = dma.vmem_to_hbm [thread:$0]  %s898_s17, 384, %s1206_s5, [#allocation4]  }
 0x3c0   :  { %1078 = dma.done.wait [#allocation4], 384  }
 0x3c1   :  { %1079 = vsyncadd [#allocation4], 4294966912 }
 0x3c2   :  { %904 = vsyncpa [#allocation3], 1 }
 0x3c3   :  { %905 = vsyncpa [#allocation6], 1 }
 0x3c4   :  { %906 = vsyncpa [#allocation9], 1 }
 0x3c5   :  { %907 = vsyncpa [#allocation4], 1 }

</bundles_post_ra>
